<compile_context>
chip_gen: v6e
topology: v6e:2x2x1
jax: 0.10.0
libtpu: 0.0.40
codegen_flags: <defaults>
</compile_context>

<pallas_src>
import jax
import jax.numpy as jnp
from jax.experimental import pallas as pl
from jax.experimental.pallas import tpu as pltpu


def _round_up(x, m):
    return (x + m - 1) // m * m


def _make_l1_sum_kernel(rows, tile_r, inner, num_tiles, need_mask):
    """Grid = (p, inner); the reduction axis (inner) is last. Accumulates
    sum|a - b| directly into the VMEM-resident (8,128) output block."""

    def kernel(a_ref, b_ref, out_ref):
        pi = pl.program_id(0)
        j = pl.program_id(1)

        @pl.when(j == 0)
        def _():
            out_ref[...] = jnp.zeros_like(out_ref)

        # abs-diff in native dtype, widen only for the reduction
        # (bf16 VALU on v6e/v7x; the cast is a no-op for f32 inputs).
        d = jnp.abs(a_ref[...] - b_ref[...]).astype(jnp.float32)

        if not need_mask:
            # (tile_r,128) -> (tile_r//8, 8, 128): vreg-aligned split, so the
            # axis-0 sum is pure per-vreg VPU adds that hide under input DMA.
            out_ref[...] += d.reshape(-1, 8, 128).sum(axis=0)
        else:
            t = pi * inner + j                     # global tile index
            is_last = t == num_tiles - 1

            @pl.when(jnp.logical_not(is_last))
            def _():
                out_ref[...] += d.reshape(-1, 8, 128).sum(axis=0)

            @pl.when(is_last)
            def _():
                # Rows past the real row count hold unspecified VMEM contents
                # (partial block) -> mask them to zero before accumulating.
                row = t * tile_r + jax.lax.broadcasted_iota(
                    jnp.int32, (tile_r, 128), 0)
                dm = jnp.where(row < rows, d, 0.0)
                out_ref[...] += dm.reshape(-1, 8, 128).sum(axis=0)

    return kernel


def image_loss(img_in, img_out, ncrops, *, tile_rows=2048, num_cores=1):
    """Pallas equivalent of ImageLoss(ncrops)(img_in, img_out).

    img_in, img_out: (N, C, H, W) arrays (same shape/dtype; any float dtype,
    accumulation is f32). Returns a scalar f32 loss.
    num_cores: set to 2 on v7x (2 TensorCores) to shard the outer grid axis.
    """
    assert img_in.shape == img_out.shape
    elems_per_crop = 1
    for dim in img_in.shape[1:]:
        elems_per_crop *= dim
    total = img_in.shape[0] * elems_per_crop
    assert total > 0

    # ---- lane-dense (rows, 128) slab; zero-copy reshape in the common case ----
    lane_pad = (-total) % 128
    rows = (total + lane_pad) // 128

    if lane_pad == 0:
        def to_slab(x):
            return x.reshape(rows, 128)            # bitcast view, no HBM traffic
    else:
        # TODO(synk): ragged lane tail (total % 128 != 0) still takes a padded
        # copy; could be folded into the kernel with a 1-D tail reduction.
        def to_slab(x):
            flat = x.reshape(-1)
            flat = jnp.pad(flat, (0, lane_pad))    # |0-0| = 0, no effect on sum
            return flat.reshape(rows, 128)

    a = to_slab(img_in)
    b = to_slab(img_out)

    # ---- tiling ----
    tile_r = min(_round_up(tile_rows, 8), _round_up(rows, 8))
    num_tiles = pl.cdiv(rows, tile_r)
    need_mask = (rows % tile_r) != 0

    # Split the outer axis only where there are TensorCores to feed
    # (v7x has 2 TCs; v5e/v6e have 1 -> keep the DMA stream sequential).
    p = num_cores if (num_cores > 1 and num_tiles % num_cores == 0) else 1
    inner = num_tiles // p

    if p > 1:
        dim_sem = (pltpu.CORE_PARALLEL, pltpu.ARBITRARY)
    else:
        dim_sem = ("arbitrary", "arbitrary")

    itemsize = jnp.dtype(img_in.dtype).itemsize
    cost = pl.CostEstimate(
        flops=3 * total,
        transcendentals=0,
        bytes_accessed=2 * total * itemsize + p * 8 * 128 * 4,
    )

    kernel = _make_l1_sum_kernel(rows, tile_r, inner, num_tiles, need_mask)

    partials = pl.pallas_call(
        kernel,
        out_shape=jax.ShapeDtypeStruct((p * 8, 128), jnp.float32),
        grid_spec=pltpu.PrefetchScalarGridSpec(
            num_scalar_prefetch=0,
            grid=(p, inner),
            in_specs=[
                pl.BlockSpec((tile_r, 128), lambda pi, j: (pi * inner + j, 0)),
                pl.BlockSpec((tile_r, 128), lambda pi, j: (pi * inner + j, 0)),
            ],
            out_specs=pl.BlockSpec((8, 128), lambda pi, j: (pi, 0)),
        ),
        compiler_params=pltpu.CompilerParams(dimension_semantics=dim_sem),
        cost_estimate=cost,
    )(a, b)

    # Fold per-crop 1/elems and final 1/ncrops into one scale (same-size crops).
    return jnp.sum(partials) / (float(elems_per_crop) * float(ncrops))


def image_loss_ref(img_in, img_out, ncrops):
    """Pure-JAX reference mirroring the PyTorch loop."""
    per_crop_mean = jnp.mean(
        jnp.abs(img_in.astype(jnp.float32) - img_out.astype(jnp.float32)),
        axis=tuple(range(1, img_in.ndim)),
    )
    return jnp.sum(per_crop_mean) / ncrops


if __name__ == "__main__":
    key = jax.random.PRNGKey(0)
    k1, k2, k3, k4 = jax.random.split(key, 4)

    # Batch of N=10 crops (ncrops=10), each crop is C=4, 16x16.
    ncrops = 10
    img_in = jax.random.normal(k1, (ncrops, 4, 16, 16), dtype=jnp.float32)
    img_out = jax.random.normal(k2, (ncrops, 4, 16, 16), dtype=jnp.float32)

    loss = image_loss(img_in, img_out, ncrops)
    loss = jax.block_until_ready(loss)
    ref = image_loss_ref(img_in, img_out, ncrops)
    assert jnp.allclose(loss, ref, rtol=1e-5, atol=1e-6), (loss, ref)

    # Small extra shape that exercises the multi-tile + ragged-row-mask path.
    a2 = jax.random.normal(k3, (3, 4, 16, 16), dtype=jnp.float32)
    b2 = jax.random.normal(k4, (3, 4, 16, 16), dtype=jnp.float32)
    loss2 = jax.block_until_ready(image_loss(a2, b2, 3, tile_rows=16))
    ref2 = image_loss_ref(a2, b2, 3)
    assert jnp.allclose(loss2, ref2, rtol=1e-5, atol=1e-6), (loss2, ref2)

    print("KERNEL_OK")
</pallas_src>

<mosaic_0001>
module attributes {stable_mosaic.version = 11 : i64} {
  func.func @kernel(%arg0: i32, %arg1: i32, %arg2: memref<80x128xf32, #tpu.memory_space<vmem>>, %arg3: memref<80x128xf32, #tpu.memory_space<vmem>>, %arg4: memref<8x128xf32, #tpu.memory_space<vmem>>) attributes {dimension_semantics = [#tpu.dimension_semantics<arbitrary>, #tpu.dimension_semantics<arbitrary>], iteration_bounds = array<i64: 1, 1>, scalar_prefetch = 0 : i64, scratch_operands = 0 : i64, tpu.core_type = #tpu.core_type<tc>, window_params = [{transform_indices = @transform_0, window_bounds = array<i64: 80, 128>}, {transform_indices = @transform_1, window_bounds = array<i64: 80, 128>}, {transform_indices = @transform_2, window_bounds = array<i64: 8, 128>}]} {
    %c0_i32 = arith.constant 0 : i32
    %0 = arith.cmpi eq, %arg1, %c0_i32 : i32
    %1 = arith.extui %0 : i1 to i32
    %c0_i32_0 = arith.constant 0 : i32
    %2 = arith.cmpi ne, %1, %c0_i32_0 : i32
    scf.if %2 {
      %cst_8 = arith.constant 0.000000e+00 : f32
      %12 = vector.broadcast %cst_8 : f32 to vector<8x128xf32>
      %c0_9 = arith.constant 0 : index
      %c0_10 = arith.constant 0 : index
      %13 = vector.load %arg4[%c0_9, %c0_10] : memref<8x128xf32, #tpu.memory_space<vmem>>, vector<8x128xf32>
      tpu.vector_store %arg4[%c0_9, %c0_10], %12 {strides = array<i32>} : memref<8x128xf32, #tpu.memory_space<vmem>>, vector<8x128xf32>,
    } else {
    }
    %c0 = arith.constant 0 : index
    %c0_1 = arith.constant 0 : index
    %3 = vector.load %arg2[%c0, %c0_1] : memref<80x128xf32, #tpu.memory_space<vmem>>, vector<80x128xf32>
    %c0_2 = arith.constant 0 : index
    %c0_3 = arith.constant 0 : index
    %4 = vector.load %arg3[%c0_2, %c0_3] : memref<80x128xf32, #tpu.memory_space<vmem>>, vector<80x128xf32>
    %5 = arith.subf %3, %4 : vector<80x128xf32>
    %6 = math.absf %5 : vector<80x128xf32>
    %c0_4 = arith.constant 0 : index
    %c0_5 = arith.constant 0 : index
    %7 = vector.load %arg4[%c0_4, %c0_5] : memref<8x128xf32, #tpu.memory_space<vmem>>, vector<8x128xf32>
    %8 = vector.shape_cast %6 : vector<80x128xf32> to vector<10x8x128xf32>
    %cst = arith.constant dense<0.000000e+00> : vector<8x128xf32>
    %9 = vector.multi_reduction <add>, %8, %cst [0] : vector<10x8x128xf32> to vector<8x128xf32>
    %10 = arith.addf %7, %9 : vector<8x128xf32>
    %c0_6 = arith.constant 0 : index
    %c0_7 = arith.constant 0 : index
    %11 = vector.load %arg4[%c0_6, %c0_7] : memref<8x128xf32, #tpu.memory_space<vmem>>, vector<8x128xf32>
    tpu.vector_store %arg4[%c0_6, %c0_7], %10 {strides = array<i32>} : memref<8x128xf32, #tpu.memory_space<vmem>>, vector<8x128xf32>,
    return
  }
  func.func @transform_0(%arg0: i32, %arg1: i32) -> (i32, i32) {
    %c1_i32 = arith.constant 1 : i32
    %0 = arith.muli %arg0, %c1_i32 : i32
    %1 = arith.addi %0, %arg1 : i32
    %c0_i32 = arith.constant 0 : i32
    %c0_i32_0 = arith.constant 0 : i32
    return %1, %c0_i32 : i32, i32
  }
  func.func @transform_1(%arg0: i32, %arg1: i32) -> (i32, i32) {
    %c1_i32 = arith.constant 1 : i32
    %0 = arith.muli %arg0, %c1_i32 : i32
    %1 = arith.addi %0, %arg1 : i32
    %c0_i32 = arith.constant 0 : i32
    %c0_i32_0 = arith.constant 0 : i32
    return %1, %c0_i32 : i32, i32
  }
  func.func @transform_2(%arg0: i32, %arg1: i32) -> (i32, i32) {
    %c0_i32 = arith.constant 0 : i32
    %c0_i32_0 = arith.constant 0 : i32
    return %arg0, %c0_i32 : i32, i32
  }
}

</mosaic_0001>

<bundles_post_ra>
// kernel: tpu_custom_call.1
= control target key start
LH: loop header
LB: loop body
LE: loop exit
PB: predicated region body
PF: predicated region fallthrough
CT: control target
= control target key end

     0   :  { %7 = vsyncpa [#allocation3], 0  ;;  %s226_s0 = inlined_call_operand.hbm [shape: f32[80,128], index: 0, kind: input, shape index: {}]   ;;  %s227_s1 = inlined_call_operand.hbm [shape: f32[80,128], index: 1, kind: input, shape index: {}]   ;;  %s228_s2 = inlined_call_operand.hbm [shape: f32[8,128], index: 2, kind: output, shape index: {}]  }
   0x1   :  { %8 = vsyncpa [#allocation6], 0 }
   0x2   :  { %9 = vsyncpa [#allocation4], 0  ;;  %s197_s9 = smov [#allocation2]  }
   0x3   :  { %s19_s10 = sshll.u32 %s197_s9, 4  ;;  %s20_s10 = int_to_ptr.vmem [resolvable:$true] %s19_s10 }
   0x4   :  { %s139_s11 = scalar_lea.vmem %s20_s10, 1280  ;;  %p144_p1 = scmp.lt.s32.totalorder %s20_s10, %s20_s10 }
   0x5   :  { %p140_p0 = scmp.ne.s32.totalorder %s20_s10, %s139_s11  ;;  %p145_p2 = scmp.lt.s32.totalorder %s139_s11, %s139_s11 }
   0x7   :  { %p146_p3 = por %p145_p2, %p144_p1 }
   0x9   :  { %p147_p4 = pnand %p146_p3, %p140_p0 }
   0xb   :  { %150 = shalt.err (!%p147_p4)
}
   0xc   :  { %s198_s12 = smov 128   ;;  %s199_s13 = smov 8  }
   0xd   :  { %25 = dma.hbm_to_vmem [thread:$0]  %s226_s0, 1280, %s20_s10, [#allocation3], %s198_s12, %s198_s12, %s199_s13  }
   0xe   :  { %s200_s16 = smov [#allocation5]  }
   0xf   :  { %s35_s17 = sshll.u32 %s200_s16, 4  ;;  %s36_s17 = int_to_ptr.vmem [resolvable:$true] %s35_s17 }
  0x10   :  { %s159_s18 = scalar_lea.vmem %s36_s17, 1280  ;;  %p164_p6 = scmp.lt.s32.totalorder %s36_s17, %s36_s17 }
  0x11   :  { %p160_p5 = scmp.ne.s32.totalorder %s36_s17, %s159_s18  ;;  %p165_p7 = scmp.lt.s32.totalorder %s159_s18, %s159_s18 }
  0x13   :  { %p166_p8 = por %p165_p7, %p164_p6 }
  0x15   :  { %p167_p9 = pnand %p166_p8, %p160_p5 }
  0x17   :  { %170 = shalt.err (!%p167_p9)
}
  0x18   :  { %41 = dma.hbm_to_vmem [thread:$0]  %s227_s1, 1280, %s36_s17, [#allocation6], %s198_s12, %s198_s12, %s199_s13  }
  0x19   :  { %191 = dma.done.wait [#allocation3], 1280  }
  0x1a   :  { %192 = vsyncadd [#allocation3], 4294966016 }
  0x1b   :  { %193 = dma.done.wait [#allocation6], 1280  }
  0x1c   :  { %194 = vsyncadd [#allocation6], 4294966016  ;;  %v57_v0 = vld [vmem:[#allocation2] sm:$0xff]  ;;  %v58_v1 = vld [vmem:[#allocation2 + $0x8] sm:$0xff]  ;;  %s201_s0 = smov [#allocation7]  }
  0x1d   :  { %v59_v2 = vld [vmem:[#allocation2 + $0x10] sm:$0xff]  ;;  %v60_v3 = vld [vmem:[#allocation2 + $0x18] sm:$0xff]  ;;  %v61_v4 = vld [vmem:[#allocation2 + $0x20] sm:$0xff]  ;;  %s115_s1 = sshll.u32 %s201_s0, 4  ;;  %s116_s1 = int_to_ptr.vmem [resolvable:$true] %s115_s1 }
  0x1e   :  { %v67_v5 = vld [vmem:[#allocation5] sm:$0xff]  ;;  %v68_v6 = vld [vmem:[#allocation5 + $0x8] sm:$0xff]  ;;  %v69_v7 = vld [vmem:[#allocation5 + $0x10] sm:$0xff]  ;;  %s171_s21 = scalar_lea.vmem %s116_s1, 128  ;;  %p176_p11 = scmp.lt.s32.totalorder %s116_s1, %s116_s1 }
  0x1f   :  { %v70_v8 = vld [vmem:[#allocation5 + $0x18] sm:$0xff]  ;;  %v71_v9 = vld [vmem:[#allocation5 + $0x20] sm:$0xff]  ;;  %v77_v10 = vsub.f32 %v57_v0, %v67_v5  ;;  %v78_v11 = vsub.f32 %v58_v1, %v68_v6  ;;  %v79_v12 = vsub.f32 %v59_v2, %v69_v7  ;;  %v72_v15 = vld [vmem:[#allocation5 + $0x28] sm:$0xff]  ;;  %p172_p10 = scmp.ne.s32.totalorder %s116_s1, %s171_s21  ;;  %p177_p12 = scmp.lt.s32.totalorder %s171_s21, %s171_s21 }
  0x20   :  { %v80_v13 = vsub.f32 %v60_v3, %v70_v8  ;;  %v62_v14 = vld [vmem:[#allocation2 + $0x28] sm:$0xff]  ;;  %v81_v17 = vsub.f32 %v61_v4, %v71_v9  ;;  %v63_v20 = vld [vmem:[#allocation2 + $0x30] sm:$0xff]  ;;  %v73_v21 = vld [vmem:[#allocation5 + $0x30] sm:$0xff] }
  0x21   :  { %v87_v16 = vand.u32 2147483647, %v77_v10  ;;  %v88_v18 = vand.u32 2147483647, %v78_v11  ;;  %v89_v19 = vand.u32 2147483647, %v79_v12  ;;  %v82_v22 = vsub.f32 %v62_v14, %v72_v15  ;;  %p178_p13 = por %p177_p12, %p176_p11 }
  0x22   :  { %v90_v23 = vand.u32 2147483647, %v80_v13  ;;  %v64_v25 = vld [vmem:[#allocation2 + $0x38] sm:$0xff]  ;;  %v74_v26 = vld [vmem:[#allocation5 + $0x38] sm:$0xff]  ;;  %v83_v27 = vsub.f32 %v63_v20, %v73_v21  ;;  %v91_v28 = vand.u32 2147483647, %v81_v17 }
  0x23   :  { %v98_v24 = vadd.f32 %v88_v18, %v87_v16  ;;  %v65_v30 = vld [vmem:[#allocation2 + $0x40] sm:$0xff]  ;;  %v75_v31 = vld [vmem:[#allocation5 + $0x40] sm:$0xff]  ;;  %v84_v32 = vsub.f32 %v64_v25, %v74_v26  ;;  %v92_v33 = vand.u32 2147483647, %v82_v22  ;;  %v66_v35 = vld [vmem:[#allocation2 + $0x48] sm:$0xff]  ;;  %p179_p0 = pnand %p178_p13, %p172_p10 }
  0x24   :  { %v76_v36 = vld [vmem:[#allocation5 + $0x48] sm:$0xff]  ;;  %v85_v37 = vsub.f32 %v65_v30, %v75_v31  ;;  %v93_v38 = vand.u32 2147483647, %v83_v27 }
  0x25   :  { %v99_v29 = vadd.f32 %v98_v24, %v89_v19  ;;  %v86_v40 = vsub.f32 %v66_v35, %v76_v36  ;;  %v94_v41 = vand.u32 2147483647, %v84_v32 }
  0x26   :  { %v95_v43 = vand.u32 2147483647, %v85_v37 }
  0x27   :  { %v100_v34 = vadd.f32 %v99_v29, %v90_v23  ;;  %v96_v45 = vand.u32 2147483647, %v86_v40 }
  0x29   :  { %v101_v39 = vadd.f32 %v100_v34, %v91_v28 }
  0x2b   :  { %v102_v42 = vadd.f32 %v101_v39, %v92_v33 }
  0x2d   :  { %v103_v44 = vadd.f32 %v102_v42, %v93_v38 }
  0x2f   :  { %v104_v46 = vadd.f32 %v103_v44, %v94_v41 }
  0x31   :  { %v105_v47 = vadd.f32 %v104_v46, %v95_v43 }
  0x33   :  { %v106_v48 = vadd.f32 %v105_v47, %v96_v45 }
  0x35   :  { %108 = vst [vmem:[#allocation7] sm:$0xff] %v106_v48 }
  0x36   :  { %182 = shalt.err (!%p179_p0)
}
  0x37   :  { %118 = dma.vmem_to_hbm [thread:$0]  %s116_s1, 128, %s228_s2, [#allocation4]  }
  0x38   :  { %195 = dma.done.wait [#allocation4], 128  }
  0x39   :  { %196 = vsyncadd [#allocation4], 4294967168 }
  0x3a   :  { %122 = vsyncpa [#allocation3], 1 }
  0x3b   :  { %123 = vsyncpa [#allocation6], 1 }
  0x3c   :  { %124 = vsyncpa [#allocation4], 1 }

</bundles_post_ra>
